<compile_context>
chip_gen: v7x
topology: tpu7x:2x2x1
jax: 0.10.0
libtpu: 0.0.40
codegen_flags: <defaults>
</compile_context>

<pallas_src>
import functools

import jax
import jax.numpy as jnp
from jax.experimental import pallas as pl
from jax.experimental.pallas import tpu as pltpu


def get_same_padding(size, kernel, dilation, stride):
    return ((size - 1) * (stride - 1) + dilation * (kernel - 1)) // 2


def _vmem_capacity_bytes():
    try:
        info = pltpu.get_tpu_info()
        cap = getattr(info, "vmem_capacity_bytes", None)
        if cap:
            return int(cap)
    except Exception:
        pass
    return 64 * 2 ** 20          # conservative default (v7x per-TensorCore VMEM)


def _adaptive_conv2dmod_kernel(mod_ref, attn_ref, w_ref, x_ref, o_ref, wc_ref, *,
                               dilation, wp, demod, eps):
    """One grid step = one (out-channel tile, batch, spatial row-block).

    mod_ref : (1, 1, K*Cin)      per-batch (mod + 1), pre-tiled over kw
    attn_ref: (1, 1, N)          per-batch kernel-selection softmax
    w_ref   : (N, K, TO, K*Cin)  base weights: one (TO, kw*Cin) matmul slab per kh
    x_ref   : (1, 1, Cin, XT)    padded fmap row-block (spatial flat on lanes + halo)
    o_ref   : (1, 1, TO, TW)     output row-block on the padded-width grid (TW = TH*Wp)
    wc_ref  : (K, TO, K*Cin)     VMEM scratch: prepared weights, cached across S steps
    """
    n_kernels, K = w_ref.shape[0], w_ref.shape[1]
    TW = o_ref.shape[-1]
    s = pl.program_id(2)

    # ---- per-(O-tile, batch) weight preparation, cached across the spatial axis ----
    @pl.when(s == 0)
    def _prepare_weights():
        if n_kernels == 1:
            wc = w_ref[0].astype(jnp.float32)                      # (K, TO, K*C)
        else:
            attn = attn_ref[0].astype(jnp.float32)                 # (1, N)
            wc = w_ref[0].astype(jnp.float32) * attn[:, 0:1]
            for n in range(1, n_kernels):
                wc = wc + w_ref[n].astype(jnp.float32) * attn[:, n:n + 1]
        wc = wc * mod_ref[0].astype(jnp.float32)                   # (mod + 1) modulation
        if demod:
            ss = jnp.sum(wc * wc, axis=(0, 2), keepdims=True)      # (1, TO, 1)
            wc = wc * jax.lax.rsqrt(jnp.maximum(ss, eps))          # == clamp(eps).rsqrt()
        wc_ref[...] = wc.astype(wc_ref.dtype)                      # bf16 for the MXU

    # ---- conv: K MXU matmuls, contraction K*Cin (kw taps fused via lane shifts) ----
    acc = None
    for kh in range(K):
        base = dilation * kh * wp
        xk = jnp.concatenate(
            [x_ref[0, 0, :, base + dilation * kw: base + dilation * kw + TW]
             for kw in range(K)], axis=0)                          # (K*C, TW) bf16
        part = jnp.dot(wc_ref[kh], xk, preferred_element_type=jnp.float32)
        acc = part if acc is None else acc + part
    o_ref[0, 0] = acc.astype(o_ref.dtype)


def adaptive_conv2d_mod(fmap, mod, weights, kernel_mod=None, *, demod=True,
                        stride=1, dilation=1, eps=1e-8,
                        compute_dtype=jnp.bfloat16, spatial_tile_rows=None):
    """fmap: (B, Cin, H, W), mod: (B, Cin), weights: (N, O, Cin, K, K),
    kernel_mod: (B, N) or None.  Returns (B, O, Hout, Wout)."""
    B, C, H, W = fmap.shape
    N, O, Cw, K, K2 = weights.shape
    assert Cw == C and K2 == K
    assert stride == 1, "Pallas path implements stride=1 (the module default)."
    # TODO(synk): stride > 1 (strided grouped conv) is not implemented in the Pallas path.

    # Batch-broadcast mod / kernel_mod like the reference `repeat(b -> (s b))`.
    if mod.shape[0] != B:
        mod = jnp.tile(mod, (B // mod.shape[0], 1))
    has_km = kernel_mod is not None and kernel_mod.size > 0
    assert (N > 1) == has_km, "kernel_mod must be supplied iff num_conv_kernels > 1"
    if has_km and kernel_mod.shape[0] != B:
        kernel_mod = jnp.tile(kernel_mod, (B // kernel_mod.shape[0], 1))

    p = get_same_padding(H, K, dilation, stride)
    Hp, Wp = H + 2 * p, W + 2 * p
    Hout = Hp - dilation * (K - 1)
    Wout = Wp - dilation * (K - 1)
    halo = dilation * (K - 1)                                # extra input rows per tile
    max_tap = dilation * ((K - 1) * Wp + (K - 1))
    KC = K * C

    x_itemsize = jnp.dtype(compute_dtype).itemsize
    o_itemsize = jnp.dtype(fmap.dtype).itemsize

    # Output-channel tiling (full O when small or not 128-divisible).
    TO = O if (O <= 128 or O % 128 != 0) else 128
    n_ot = O // TO

    # Generation-aware VMEM budget and spatial (output-row) tile selection.
    vmem_cap = _vmem_capacity_bytes()
    budget = max(24 * 2 ** 20, vmem_cap - 16 * 2 ** 20)
    w_slab = N * K * TO * KC * 4
    wc_scr = K * TO * KC * x_itemsize

    def footprint(th):
        xt = (th + halo) * Wp + halo
        x_tile = C * xt * x_itemsize
        o_tile = TO * th * Wp * o_itemsize
        x_cat = KC * th * Wp * x_itemsize                    # fused matmul operand
        acc_b = TO * th * Wp * 4                             # f32 accumulator
        prep = K * TO * KC * 4                               # f32 weight-prep temp
        return 2 * (x_tile + o_tile) + 2 * w_slab + wc_scr + x_cat + acc_b + prep + (2 << 20)

    if spatial_tile_rows is not None:
        TH = max(1, min(int(spatial_tile_rows), Hout))
    else:
        TH = Hout
        while TH > 1 and footprint(TH) > budget:
            TH = (TH + 1) // 2
    n_sp = -(-Hout // TH)
    TW = TH * Wp
    XT = TW + max_tap

    # Zero-pad spatially, flatten spatial onto the lane axis, and slice into
    # overlapping (halo-carrying) row blocks so every BlockSpec is block-aligned.
    xpad = jnp.pad(fmap, ((0, 0), (0, 0), (p, p), (p, p))).astype(compute_dtype)
    xflat = xpad.reshape(B, C, Hp * Wp)
    needed = (n_sp - 1) * TW + XT
    if needed > Hp * Wp:
        xflat = jnp.pad(xflat, ((0, 0), (0, 0), (0, needed - Hp * Wp)))
    if n_sp == 1:
        x_tiles = xflat[:, :, :XT].reshape(B, 1, C, XT)
    else:
        idx = (jnp.arange(n_sp) * TW)[:, None] + jnp.arange(XT)[None, :]
        x_tiles = jnp.transpose(xflat[:, :, idx], (0, 2, 1, 3))   # (B, n_sp, C, XT)

    # Weights (N, O, C, Kh, Kw) -> (N, Kh, O, Kw*C): one (TO, K*C) matmul slab per kh.
    w_f = jnp.transpose(weights.astype(jnp.float32), (0, 3, 1, 4, 2)).reshape(N, K, O, KC)

    # Per-batch modulation (mod + 1), tiled over kw to match the fused weight layout.
    modw = jnp.tile(mod.astype(jnp.float32) + 1.0, (1, K)).reshape(B, 1, KC)

    # Adaptive kernel attention (tiny, parameter-sized -> computed host/XLA side).
    if has_km:
        attn = jax.nn.softmax(kernel_mod.astype(jnp.float32), axis=-1)   # (B, N)
    else:
        attn = jnp.ones((B, N), dtype=jnp.float32)
    attn3 = attn.reshape(B, 1, N)

    kernel = functools.partial(_adaptive_conv2dmod_kernel,
                               dilation=dilation, wp=Wp, demod=demod, eps=eps)

    vmem_limit = int(min(vmem_cap - 2 * 2 ** 20,
                         max(32 * 2 ** 20, footprint(TH) + 8 * 2 ** 20)))

    flops = 2 * B * O * K * KC * n_sp * TW
    bytes_accessed = (B * n_sp * C * XT * x_itemsize + N * K * O * KC * 4
                      + B * n_sp * O * TW * o_itemsize + B * KC * 4 + B * N * 4)

    out_tiles = pl.pallas_call(
        kernel,
        out_shape=jax.ShapeDtypeStruct((B, n_sp, O, TW), fmap.dtype),
        grid_spec=pltpu.PrefetchScalarGridSpec(
            num_scalar_prefetch=0,
            grid=(n_ot, B, n_sp),     # O-tiles outermost: weight slab fetched once per tile
            in_specs=[
                pl.BlockSpec((1, 1, KC), lambda j, b, s: (b, 0, 0)),          # (mod + 1)
                pl.BlockSpec((1, 1, N), lambda j, b, s: (b, 0, 0)),           # kernel attn
                pl.BlockSpec((N, K, TO, KC), lambda j, b, s: (0, 0, j, 0)),   # weights
                pl.BlockSpec((1, 1, C, XT), lambda j, b, s: (b, s, 0, 0)),    # fmap row-block
            ],
            out_specs=pl.BlockSpec((1, 1, TO, TW), lambda j, b, s: (b, s, j, 0)),
            scratch_shapes=[pltpu.VMEM((K, TO, KC), compute_dtype)],
        ),
        compiler_params=pltpu.CompilerParams(
            # spatial axis stays "arbitrary" so the cached weight scratch always sees s == 0
            # first on each core; O-tile / batch axes carry the megacore parallelism.
            dimension_semantics=("parallel", "parallel", "arbitrary"),
            vmem_limit_bytes=vmem_limit,
        ),
        cost_estimate=pl.CostEstimate(flops=int(flops), transcendentals=int(B * O),
                                      bytes_accessed=int(bytes_accessed)),
    )(modw, attn3, w_f, x_tiles)

    # (B, n_sp, O, TH*Wp) -> (B, O, Hout_pad, Wp) -> crop the padded rows / columns.
    out = jnp.transpose(out_tiles, (0, 2, 1, 3)).reshape(B, O, n_sp * TH, Wp)
    return out[:, :, :Hout, :Wout]


def adaptive_conv2d_mod_ref(fmap, mod, weights, kernel_mod=None, *, demod=True,
                            stride=1, dilation=1, eps=1e-8):
    """Pure-JAX reference mirroring the PyTorch forward (grouped conv, f32 HIGHEST)."""
    B, C, H, W = fmap.shape
    N, O, _, K, _ = weights.shape
    if mod.shape[0] != B:
        mod = jnp.tile(mod, (B // mod.shape[0], 1))
    wf = weights.astype(jnp.float32)
    if kernel_mod is not None and kernel_mod.size > 0:
        if kernel_mod.shape[0] != B:
            kernel_mod = jnp.tile(kernel_mod, (B // kernel_mod.shape[0], 1))
        attn = jax.nn.softmax(kernel_mod.astype(jnp.float32), axis=-1)        # (B, N)
        w = jnp.sum(wf[None] * attn[:, :, None, None, None, None], axis=1)     # (B, O, C, K, K)
    else:
        w = jnp.broadcast_to(wf[0][None], (B, O, C, K, K))
    w = w * (mod.astype(jnp.float32)[:, None, :, None, None] + 1.0)
    if demod:
        ss = jnp.sum(w * w, axis=(2, 3, 4), keepdims=True)
        w = w * jax.lax.rsqrt(jnp.maximum(ss, eps))
    p = get_same_padding(H, K, dilation, stride)
    x = fmap.reshape(1, B * C, H, W)
    wr = w.reshape(B * O, C, K, K)
    out = jax.lax.conv_general_dilated(
        x, wr, window_strides=(stride, stride), padding=((p, p), (p, p)),
        rhs_dilation=(dilation, dilation),
        dimension_numbers=("NCHW", "OIHW", "NCHW"),
        feature_group_count=B,
        precision=jax.lax.Precision.HIGHEST)
    return out.reshape(B, O, out.shape[-2], out.shape[-1]).astype(fmap.dtype)


if __name__ == "__main__":
    key = jax.random.PRNGKey(0)
    k1, k2, k3, k4 = jax.random.split(key, 4)

    B, C, O, H, W = 2, 4, 8, 16, 16        # batch, dim, dim_out, spatial
    K, N = 3, 2                            # kernel size, num_conv_kernels (adaptive)

    fmap = jax.random.normal(k1, (B, C, H, W), dtype=jnp.float32)
    mod = jax.random.normal(k2, (B, C), dtype=jnp.float32)
    kernel_mod = jax.random.normal(k3, (B, N), dtype=jnp.float32)
    weights = jax.random.normal(k4, (N, O, C, K, K), dtype=jnp.float32)
    weights = weights * (2.0 / (C * K * K)) ** 0.5      # kaiming-like scale

    def check(out, ref, name):
        out = jax.block_until_ready(out)
        max_abs = float(jnp.max(jnp.abs(out - ref)))
        rel_fro = float(jnp.linalg.norm(out - ref) / jnp.linalg.norm(ref))
        # bf16 MXU operands with f32 accumulation -> PyTorch-level tolerance.
        assert jnp.allclose(out, ref, atol=3e-2, rtol=3e-2), f"{name}: max abs diff {max_abs}"
        assert rel_fro < 2e-2, f"{name}: relative Frobenius error {rel_fro}"

    # adaptive path (num_conv_kernels = 2), single spatial tile
    ref = adaptive_conv2d_mod_ref(fmap, mod, weights, kernel_mod, demod=True)
    out = adaptive_conv2d_mod(fmap, mod, weights, kernel_mod, demod=True)
    assert out.shape == (B, O, H, W), out.shape
    check(out, ref, "adaptive")

    # multi-spatial-tile path (exercises the s-axis grid + cached weight scratch)
    out_t = adaptive_conv2d_mod(fmap, mod, weights, kernel_mod, demod=True,
                                spatial_tile_rows=4)
    check(out_t, ref, "adaptive/tiled")

    # non-adaptive path (num_conv_kernels = 1, kernel_mod absent -> mixing skipped)
    w1 = weights[:1]
    ref1 = adaptive_conv2d_mod_ref(fmap, mod, w1, None, demod=True)
    out1 = adaptive_conv2d_mod(fmap, mod, w1, None, demod=True)
    check(out1, ref1, "non-adaptive")

    print("KERNEL_OK")
</pallas_src>

<mosaic_0001>
module attributes {stable_mosaic.version = 11 : i64} {
  func.func @_adaptive_conv2dmod_kernel(%arg0: i32, %arg1: i32, %arg2: i32, %arg3: memref<1x1x12xf32, #tpu.memory_space<vmem>>, %arg4: memref<1x1x2xf32, #tpu.memory_space<vmem>>, %arg5: memref<2x3x8x12xf32, #tpu.memory_space<vmem>>, %arg6: memref<1x1x4x326xbf16, #tpu.memory_space<vmem>>, %arg7: memref<1x1x8x288xf32, #tpu.memory_space<vmem>>, %arg8: memref<3x8x12xbf16, #tpu.memory_space<vmem>>) attributes {dimension_semantics = [#tpu.dimension_semantics<parallel>, #tpu.dimension_semantics<parallel>, #tpu.dimension_semantics<arbitrary>], iteration_bounds = array<i64: 1, 2, 1>, scalar_prefetch = 0 : i64, scratch_operands = 1 : i64, tpu.core_type = #tpu.core_type<tc>, window_params = [{transform_indices = @transform_0, window_bounds = array<i64: 1, 1, 12>}, {transform_indices = @transform_1, window_bounds = array<i64: 1, 1, 2>}, {transform_indices = @transform_2, window_bounds = array<i64: 2, 3, 8, 12>}, {transform_indices = @transform_3, window_bounds = array<i64: 1, 1, 4, 326>}, {transform_indices = @transform_4, window_bounds = array<i64: 1, 1, 8, 288>}]} {
    %c0_i32 = arith.constant 0 : i32
    %0 = arith.cmpi eq, %arg2, %c0_i32 : i32
    %1 = arith.extui %0 : i1 to i32
    %c0_i32_0 = arith.constant 0 : i32
    %2 = arith.cmpi ne, %1, %c0_i32_0 : i32
    scf.if %2 {
      %c0_43 = arith.constant 0 : index
      %c0_44 = arith.constant 0 : index
      %c0_45 = arith.constant 0 : index
      %38 = vector.load %arg4[%c0_43, %c0_44, %c0_45] : memref<1x1x2xf32, #tpu.memory_space<vmem>>, vector<1x1x2xf32>
      %39 = vector.shape_cast %38 : vector<1x1x2xf32> to vector<1x2xf32>
      %c0_46 = arith.constant 0 : index
      %c0_47 = arith.constant 0 : index
      %c0_48 = arith.constant 0 : index
      %c0_49 = arith.constant 0 : index
      %40 = vector.load %arg5[%c0_46, %c0_47, %c0_48, %c0_49] : memref<2x3x8x12xf32, #tpu.memory_space<vmem>>, vector<1x3x8x12xf32>
      %41 = vector.shape_cast %40 : vector<1x3x8x12xf32> to vector<3x8x12xf32>
      %42 = vector.extract_strided_slice %39 {offsets = [0, 0], sizes = [1, 1], strides = [1, 1]} : vector<1x2xf32> to vector<1x1xf32>
      %43 = vector.shape_cast %42 : vector<1x1xf32> to vector<1x1x1xf32>
      %44 = vector.broadcast %43 : vector<1x1x1xf32> to vector<3x8x12xf32>
      %45 = arith.mulf %41, %44 : vector<3x8x12xf32>
      %c1_50 = arith.constant 1 : index
      %c0_51 = arith.constant 0 : index
      %c0_52 = arith.constant 0 : index
      %c0_53 = arith.constant 0 : index
      %46 = vector.load %arg5[%c1_50, %c0_51, %c0_52, %c0_53] : memref<2x3x8x12xf32, #tpu.memory_space<vmem>>, vector<1x3x8x12xf32>
      %47 = vector.shape_cast %46 : vector<1x3x8x12xf32> to vector<3x8x12xf32>
      %48 = vector.extract_strided_slice %39 {offsets = [0, 1], sizes = [1, 1], strides = [1, 1]} : vector<1x2xf32> to vector<1x1xf32>
      %49 = vector.shape_cast %48 : vector<1x1xf32> to vector<1x1x1xf32>
      %50 = vector.broadcast %49 : vector<1x1x1xf32> to vector<3x8x12xf32>
      %51 = arith.mulf %47, %50 : vector<3x8x12xf32>
      %52 = arith.addf %45, %51 : vector<3x8x12xf32>
      %c0_54 = arith.constant 0 : index
      %c0_55 = arith.constant 0 : index
      %c0_56 = arith.constant 0 : index
      %53 = vector.load %arg3[%c0_54, %c0_55, %c0_56] : memref<1x1x12xf32, #tpu.memory_space<vmem>>, vector<1x1x12xf32>
      %54 = vector.shape_cast %53 : vector<1x1x12xf32> to vector<1x12xf32>
      %55 = vector.shape_cast %54 : vector<1x12xf32> to vector<1x1x12xf32>
      %56 = vector.broadcast %55 : vector<1x1x12xf32> to vector<3x8x12xf32>
      %57 = arith.mulf %52, %56 : vector<3x8x12xf32>
      %58 = arith.mulf %57, %57 : vector<3x8x12xf32>
      %cst_57 = arith.constant dense<0.000000e+00> : vector<8xf32>
      %59 = vector.multi_reduction <add>, %58, %cst_57 [0, 2] : vector<3x8x12xf32> to vector<8xf32>
      %60 = vector.shape_cast %59 : vector<8xf32> to vector<1x8x1xf32>
      %cst_58 = arith.constant 9.99999993E-9 : f32
      %61 = vector.broadcast %cst_58 : f32 to vector<1x8x1xf32>
      %62 = arith.maximumf %60, %61 : vector<1x8x1xf32>
      %63 = math.rsqrt %62 : vector<1x8x1xf32>
      %64 = vector.broadcast %63 : vector<1x8x1xf32> to vector<3x8x12xf32>
      %65 = arith.mulf %57, %64 : vector<3x8x12xf32>
      %66 = arith.truncf %65 : vector<3x8x12xf32> to vector<3x8x12xbf16>
      %c0_59 = arith.constant 0 : index
      %c0_60 = arith.constant 0 : index
      %c0_61 = arith.constant 0 : index
      %67 = vector.load %arg8[%c0_59, %c0_60, %c0_61] : memref<3x8x12xbf16, #tpu.memory_space<vmem>>, vector<3x8x12xbf16>
      tpu.vector_store %arg8[%c0_59, %c0_60, %c0_61], %66 {strides = array<i32>} : memref<3x8x12xbf16, #tpu.memory_space<vmem>>, vector<3x8x12xbf16>,
    } else {
    }
    %c0 = arith.constant 0 : index
    %c0_1 = arith.constant 0 : index
    %c0_2 = arith.constant 0 : index
    %c0_3 = arith.constant 0 : index
    %3 = vector.load %arg6[%c0, %c0_1, %c0_2, %c0_3] : memref<1x1x4x326xbf16, #tpu.memory_space<vmem>>, vector<1x1x4x288xbf16>
    %4 = vector.shape_cast %3 : vector<1x1x4x288xbf16> to vector<4x288xbf16>
    %c0_4 = arith.constant 0 : index
    %c0_5 = arith.constant 0 : index
    %c0_6 = arith.constant 0 : index
    %c1 = arith.constant 1 : index
    %5 = vector.load %arg6[%c0_4, %c0_5, %c0_6, %c1] : memref<1x1x4x326xbf16, #tpu.memory_space<vmem>>, vector<1x1x4x288xbf16>
    %6 = vector.shape_cast %5 : vector<1x1x4x288xbf16> to vector<4x288xbf16>
    %c0_7 = arith.constant 0 : index
    %c0_8 = arith.constant 0 : index
    %c0_9 = arith.constant 0 : index
    %c2 = arith.constant 2 : index
    %7 = vector.load %arg6[%c0_7, %c0_8, %c0_9, %c2] : memref<1x1x4x326xbf16, #tpu.memory_space<vmem>>, vector<1x1x4x288xbf16>
    %8 = vector.shape_cast %7 : vector<1x1x4x288xbf16> to vector<4x288xbf16>
    %9 = tpu.concatenate %4, %6, %8 in 0 : vector<4x288xbf16>, vector<4x288xbf16>, vector<4x288xbf16> -> vector<12x288xbf16>
    %c0_10 = arith.constant 0 : index
    %c0_11 = arith.constant 0 : index
    %c0_12 = arith.constant 0 : index
    %10 = vector.load %arg8[%c0_10, %c0_11, %c0_12] : memref<3x8x12xbf16, #tpu.memory_space<vmem>>, vector<1x8x12xbf16>
    %11 = vector.shape_cast %10 : vector<1x8x12xbf16> to vector<8x12xbf16>
    %cst = arith.constant dense<0.000000e+00> : vector<8x288xf32>
    %12 = tpu.matmul %11, %9, %cst {dimension_numbers = #tpu.dot_dimension_numbers<[1], [0], [0], [1], [0, 0, 1, 1], [], []>} : vector<8x12xbf16>, vector<12x288xbf16>, vector<8x288xf32> -> vector<8x288xf32>
    %c0_13 = arith.constant 0 : index
    %c0_14 = arith.constant 0 : index
    %c0_15 = arith.constant 0 : index
    %c18 = arith.constant 18 : index
    %13 = vector.load %arg6[%c0_13, %c0_14, %c0_15, %c18] : memref<1x1x4x326xbf16, #tpu.memory_space<vmem>>, vector<1x1x4x288xbf16>
    %14 = vector.shape_cast %13 : vector<1x1x4x288xbf16> to vector<4x288xbf16>
    %c0_16 = arith.constant 0 : index
    %c0_17 = arith.constant 0 : index
    %c0_18 = arith.constant 0 : index
    %c19 = arith.constant 19 : index
    %15 = vector.load %arg6[%c0_16, %c0_17, %c0_18, %c19] : memref<1x1x4x326xbf16, #tpu.memory_space<vmem>>, vector<1x1x4x288xbf16>
    %16 = vector.shape_cast %15 : vector<1x1x4x288xbf16> to vector<4x288xbf16>
    %c0_19 = arith.constant 0 : index
    %c0_20 = arith.constant 0 : index
    %c0_21 = arith.constant 0 : index
    %c20 = arith.constant 20 : index
    %17 = vector.load %arg6[%c0_19, %c0_20, %c0_21, %c20] : memref<1x1x4x326xbf16, #tpu.memory_space<vmem>>, vector<1x1x4x288xbf16>
    %18 = vector.shape_cast %17 : vector<1x1x4x288xbf16> to vector<4x288xbf16>
    %19 = tpu.concatenate %14, %16, %18 in 0 : vector<4x288xbf16>, vector<4x288xbf16>, vector<4x288xbf16> -> vector<12x288xbf16>
    %c1_22 = arith.constant 1 : index
    %c0_23 = arith.constant 0 : index
    %c0_24 = arith.constant 0 : index
    %20 = vector.load %arg8[%c1_22, %c0_23, %c0_24] : memref<3x8x12xbf16, #tpu.memory_space<vmem>>, vector<1x8x12xbf16>
    %21 = vector.shape_cast %20 : vector<1x8x12xbf16> to vector<8x12xbf16>
    %cst_25 = arith.constant dense<0.000000e+00> : vector<8x288xf32>
    %22 = tpu.matmul %21, %19, %cst_25 {dimension_numbers = #tpu.dot_dimension_numbers<[1], [0], [0], [1], [0, 0, 1, 1], [], []>} : vector<8x12xbf16>, vector<12x288xbf16>, vector<8x288xf32> -> vector<8x288xf32>
    %23 = arith.addf %12, %22 : vector<8x288xf32>
    %c0_26 = arith.constant 0 : index
    %c0_27 = arith.constant 0 : index
    %c0_28 = arith.constant 0 : index
    %c36 = arith.constant 36 : index
    %24 = vector.load %arg6[%c0_26, %c0_27, %c0_28, %c36] : memref<1x1x4x326xbf16, #tpu.memory_space<vmem>>, vector<1x1x4x288xbf16>
    %25 = vector.shape_cast %24 : vector<1x1x4x288xbf16> to vector<4x288xbf16>
    %c0_29 = arith.constant 0 : index
    %c0_30 = arith.constant 0 : index
    %c0_31 = arith.constant 0 : index
    %c37 = arith.constant 37 : index
    %26 = vector.load %arg6[%c0_29, %c0_30, %c0_31, %c37] : memref<1x1x4x326xbf16, #tpu.memory_space<vmem>>, vector<1x1x4x288xbf16>
    %27 = vector.shape_cast %26 : vector<1x1x4x288xbf16> to vector<4x288xbf16>
    %c0_32 = arith.constant 0 : index
    %c0_33 = arith.constant 0 : index
    %c0_34 = arith.constant 0 : index
    %c38 = arith.constant 38 : index
    %28 = vector.load %arg6[%c0_32, %c0_33, %c0_34, %c38] : memref<1x1x4x326xbf16, #tpu.memory_space<vmem>>, vector<1x1x4x288xbf16>
    %29 = vector.shape_cast %28 : vector<1x1x4x288xbf16> to vector<4x288xbf16>
    %30 = tpu.concatenate %25, %27, %29 in 0 : vector<4x288xbf16>, vector<4x288xbf16>, vector<4x288xbf16> -> vector<12x288xbf16>
    %c2_35 = arith.constant 2 : index
    %c0_36 = arith.constant 0 : index
    %c0_37 = arith.constant 0 : index
    %31 = vector.load %arg8[%c2_35, %c0_36, %c0_37] : memref<3x8x12xbf16, #tpu.memory_space<vmem>>, vector<1x8x12xbf16>
    %32 = vector.shape_cast %31 : vector<1x8x12xbf16> to vector<8x12xbf16>
    %cst_38 = arith.constant dense<0.000000e+00> : vector<8x288xf32>
    %33 = tpu.matmul %32, %30, %cst_38 {dimension_numbers = #tpu.dot_dimension_numbers<[1], [0], [0], [1], [0, 0, 1, 1], [], []>} : vector<8x12xbf16>, vector<12x288xbf16>, vector<8x288xf32> -> vector<8x288xf32>
    %34 = arith.addf %23, %33 : vector<8x288xf32>
    %c0_39 = arith.constant 0 : index
    %c0_40 = arith.constant 0 : index
    %c0_41 = arith.constant 0 : index
    %c0_42 = arith.constant 0 : index
    %35 = vector.load %arg7[%c0_39, %c0_40, %c0_41, %c0_42] : memref<1x1x8x288xf32, #tpu.memory_space<vmem>>, vector<1x1x8x288xf32>
    %36 = vector.shape_cast %35 : vector<1x1x8x288xf32> to vector<8x288xf32>
    %37 = vector.shape_cast %34 : vector<8x288xf32> to vector<1x1x8x288xf32>
    tpu.vector_store %arg7[%c0_39, %c0_40, %c0_41, %c0_42], %37 {strides = array<i32>} : memref<1x1x8x288xf32, #tpu.memory_space<vmem>>, vector<1x1x8x288xf32>,
    return
  }
  func.func @transform_0(%arg0: i32, %arg1: i32, %arg2: i32) -> (i32, i32, i32) {
    %c0_i32 = arith.constant 0 : i32
    %c0_i32_0 = arith.constant 0 : i32
    %c0_i32_1 = arith.constant 0 : i32
    return %arg1, %c0_i32, %c0_i32_0 : i32, i32, i32
  }
  func.func @transform_1(%arg0: i32, %arg1: i32, %arg2: i32) -> (i32, i32, i32) {
    %c0_i32 = arith.constant 0 : i32
    %c0_i32_0 = arith.constant 0 : i32
    %c0_i32_1 = arith.constant 0 : i32
    return %arg1, %c0_i32, %c0_i32_0 : i32, i32, i32
  }
  func.func @transform_2(%arg0: i32, %arg1: i32, %arg2: i32) -> (i32, i32, i32, i32) {
    %c0_i32 = arith.constant 0 : i32
    %c0_i32_0 = arith.constant 0 : i32
    %c0_i32_1 = arith.constant 0 : i32
    %c0_i32_2 = arith.constant 0 : i32
    return %c0_i32, %c0_i32_0, %arg0, %c0_i32_1 : i32, i32, i32, i32
  }
  func.func @transform_3(%arg0: i32, %arg1: i32, %arg2: i32) -> (i32, i32, i32, i32) {
    %c0_i32 = arith.constant 0 : i32
    %c0_i32_0 = arith.constant 0 : i32
    %c0_i32_1 = arith.constant 0 : i32
    return %arg1, %arg2, %c0_i32, %c0_i32_0 : i32, i32, i32, i32
  }
  func.func @transform_4(%arg0: i32, %arg1: i32, %arg2: i32) -> (i32, i32, i32, i32) {
    %c0_i32 = arith.constant 0 : i32
    %c0_i32_0 = arith.constant 0 : i32
    return %arg1, %arg2, %arg0, %c0_i32 : i32, i32, i32, i32
  }
}

</mosaic_0001>

<bundles_post_ra>
// kernel: tpu_custom_call.1
= control target key start
LH: loop header
LB: loop body
LE: loop exit
PB: predicated region body
PF: predicated region fallthrough
CT: control target
= control target key end

     0   :  { %s1710_s0 = inlined_call_operand.hbm [shape: f32[2,1,12], index: 0, kind: input, shape index: {}]   ;;  %s1711_s1 = inlined_call_operand.vmem [shape: f32[2,1,2], index: 1, kind: input, shape index: {}]   ;;  %s1712_s2 = inlined_call_operand.hbm [shape: f32[2,3,8,12], index: 2, kind: input, shape index: {}]   ;;  %s1713_s3 = inlined_call_operand.hbm [shape: bf16[2,1,4,326], index: 3, kind: input, shape index: {}]   ;;  %s1714_s4 = inlined_call_operand.hbm [shape: f32[2,1,8,288], index: 4, kind: output, shape index: {}]  }
   0x1   :  { %1724 = sst [smem:[#allocation16_spill]] %s1710_s0 }
   0x2   :  { %9 = vsyncpa [#allocation4], 0 }
   0x3   :  { %11 = vsyncpa [#allocation4 + $0x1], 0 }
   0x4   :  { %12 = vsyncpa [#allocation7], 0 }
   0x5   :  { %13 = vsyncpa [#allocation5], 0 }
   0x6   :  { %15 = vsyncpa [#allocation5 + $0x1], 0  ;;  %s1345_s15 = smov 0   ;;  %s1347_s16 = smov 0  }
   0x7   :  { %s1349_s17 = smov 0   ;;  %s1351_s18 = smov 0  }
   0x8   :  { %s1353_s19 = smov 0   ;;  %s1355_s20 = smov 0  }
   0x9 LB: > { %1725 = sst [smem:[#allocation14_spill]] %s1299_s19  ;;  %s36_s21 = sadd.s32 1, %s1299_s19  ;;  %s1303_s20 = sphi %s1355_s20, %s21_s20   ;;  %s1299_s19 = sphi %s1353_s19, %s1745_s19   ;;  %s1295_s18 = sphi %s1351_s18, %s1744_s18   ;;  %s1291_s17 = sphi %s1349_s17, %s1748_s17   ;;  %s1287_s16 = sphi %s1347_s16, %s1747_s16   ;;  %s1283_s15 = sphi %s1345_s15, %s1746_s15  }
   0xa   : > { %s47_s22 = sadd.s32 1, %s1291_s17  ;;  %p38_p0 = scmp.ge.s32.totalorder %s36_s21, 2 }
   0xb   : > { %p54_p1 = scmp.ne.s32.totalorder %s1291_s17, %s1287_s16  ;;  %p55_p2 = scmp.eq.s32.totalorder %s1303_s20, 0 }
   0xc   : > { %s1750_s21 = smov (%p38_p0, %s36_s21), 0  ;;  %p1054_p5 = scmp.lt.s32.totalorder %s1303_s20, 2 }
   0xd   : > { %1726 = sst [smem:[#allocation15_spill]] %s1750_s21  ;;  %p56_p4 = por %p55_p2, %p54_p1 }
   0xe   : > { %s44_s23 = ssub.s32 %s1299_s19, %s1750_s21  ;;  %s209_s24 = sand.u32 1, %s1303_s20  }
   0xf   : > { %p45_p6 = scmp.eq.s32.totalorder %s44_s23, 0  ;;  %s211_s25 = sand.u32 1, %s1291_s17  }
  0x10   : > { %s965_s26 = sshll.u32 %s1299_s19, 4  ;;  %s1727_s0 = sld [smem:[#allocation16_spill]] }
  0x11   : > { %s1393_s27 = scalar_select %p45_p6, %s1291_s17, %s47_s22  }
  0x12   : > { %s212_s5 = scalar_lea.vmem [#allocation3], %s211_s25  ;;  %p1400_p7 = pnand %p1054_p5, %p56_p4 }
  0x13   : > { %s219_s6 = sshll.u32 %s212_s5, 4  ;;  %s1406_s8 = smul.u32 6, %s211_s25  ;;  %s1404_s6 = int_to_ptr.vmem [resolvable:$true] %s219_s6 }
  0x14   : > { %s1728_s7 = scalar_select %p1400_p7, 1, 0 }
  0x15   : > { %s1408_s9 = scalar_lea.sflag [#allocation4], %s209_s24  ;;  %p1718_p9 = pneg %p1400_p7 }
  0x16   : > { %s1398_s30 = scalar_lea.hbm %s1727_s0, %s965_s26  ;;  %s1130_s13 = scalar_lea.hbm %s1727_s0, 32 }
  0x17   : > { %s1125_s10 = scalar_lea.hbm %s1398_s30, 16  ;;  %p1131_p12 = scmp.lt.u32.totalorder %s1398_s30, %s1727_s0 }
  0x18   : > { %p1126_p8 = scmp.ne.s32.totalorder %s1398_s30, %s1125_s10  ;;  %p1132_p13 = scmp.lt.u32.totalorder %s1130_s13, %s1125_s10 }
  0x19   : > { %p1134_p2 = scmp.lt.u32.totalorder %s1125_s10, %s1398_s30 }
  0x1a   : > { %p1128_p10 = pnand %p1718_p9, %p1126_p8  ;;  %p1133_p0 = por %p1132_p13, %p1131_p12 }
  0x1c   : > { %p1129_p11 = pneg %p1128_p10  ;;  %p1135_p4 = por %p1134_p2, %p1133_p0 }
  0x1e   : > { %p1136_p5 = pnand %p1135_p4, %p1129_p11 }
  0x20   : > { %1139 = shalt.err (!%p1136_p5)
}
  0x21   : > { %s1140_s23 = scalar_lea.vmem %s1404_s6, 16  ;;  %s1305_s24 = smov [#allocation3]  }
  0x22   : > { %p1141_p6 = scmp.ne.s32.totalorder %s1404_s6, %s1140_s23  ;;  %s1145_s25 = sshll.u32 %s1305_s24, 4  ;;  %s1146_s25 = int_to_ptr.vmem [resolvable:$false] %s1145_s25 }
  0x23   : > { %s1147_s26 = scalar_lea.vmem %s1146_s25, 32  ;;  %p1148_p3 = scmp.lt.s32.totalorder %s1404_s6, %s1146_s25 }
  0x24   : > { %p1143_p8 = pnand %p1141_p6, %p1718_p9  ;;  %p1149_p12 = scmp.lt.s32.totalorder %s1147_s26, %s1140_s23 }
  0x26   : > { %p1144_p10 = pneg %p1143_p8  ;;  %p1150_p13 = por %p1149_p12, %p1148_p3 }
  0x28   : > { %p1151_p0 = pnand %p1150_p13, %p1144_p10 }
  0x2a   : > { %1154 = shalt.err (!%p1151_p0)
}
  0x2b   : > { %1045 = dma.hbm_to_vmem [thread:$0]  (!%p1400_p7), %s1398_s30, 16, %s1404_s6, %s1408_s9  }
  0x2c   : > { %s1437_s28 = sadd.s32 4294967295, %s1303_s20   ;;  %s961_s29 = sadd.s32 4294967294, %s1303_s20  }
  0x2d   : > { %p60_p3 = scmp.ne.s32.totalorder %s1287_s16, %s1283_s15  ;;  %p1717_p11 = scmp.eq.s32.totalorder %s1437_s28, 0 }
  0x2e   : > { %p168_p2 = scmp.eq.s32.totalorder %s1437_s28, 1  ;;  %p174_p4 = scmp.eq.s32.totalorder %s961_s29, 1 }
  0x2f   : > { %p962_p5 = scmp.ge.s32.totalorder %s1303_s20, 1  ;;  %p1447_p6 = por %p1717_p11, %p60_p3 }
  0x30   : > { %p1454_p8 = por %p168_p2, %p54_p1  ;;  %p1458_p10 = por %p174_p4, %p60_p3 }
  0x31   : > { %s1729_s5 = scalar_select %p1447_p6, 1, 0 }
  0x32   : > { %s1730_s30 = scalar_select %p1454_p8, 1, 0 }
  0x33   : > { %s1731_s6 = scalar_select %p1458_p10, 1, 0 }
  0x34   : > { %p181_p12 = scmp.lt.s32.totalorder %s1303_s20, 3  ;;  %s1306_s11 = smov [#allocation6]  }
  0x35   : > { %s195_s12 = sshll.u32 %s1306_s11, 4  ;;  %s1024_s13 = smul.u32 96, %s1299_s19  ;;  %s1467_s12 = int_to_ptr.vmem [resolvable:$true] %s195_s12 }
  0x36   : > { %p1463_p13 = pnand %p962_p5, %p181_p12  ;;  %s236_s22 = scalar_lea.vmem [#allocation8], %s1406_s8 }
  0x37   : > { %s246_s23 = sshll.u32 %s236_s22, 4  ;;  %s1482_s26 = scalar_lea.hbm %s1713_s3, %s1024_s13  ;;  %s1484_s23 = int_to_ptr.vmem [resolvable:$true] %s246_s23 }
  0x38   : > { %s1732_s10 = scalar_select %p1463_p13, 1, 0 }
  0x39   : > { %p1038_p0 = pneg %p1463_p13  ;;  %s1155_s0 = scalar_lea.hbm %s1712_s2, 768 }
  0x3a   : > { %p1156_p3 = scmp.ne.s32.totalorder %s1712_s2, %s1155_s0  ;;  %p1162_p12 = scmp.lt.u32.totalorder %s1155_s0, %s1712_s2 }
  0x3b   : > { %p1474_p1 = pnand %p1038_p0, %p1717_p11 }
  0x3d   : > { %p1157_p2 = pneg %p1474_p1 }
  0x3f   : > { %p1158_p4 = pnand %p1157_p2, %p1156_p3 }
  0x41   : > { %p1159_p5 = pneg %p1158_p4 }
  0x43   : > { %p1164_p0 = pnand %p1162_p12, %p1159_p5 }
  0x45   : > { %1167 = shalt.err (!%p1164_p0)
}
  0x46   : > { %s1168_s13 = scalar_lea.vmem %s1467_s12, 768  ;;  %p1176_p8 = scmp.lt.s32.totalorder %s1467_s12, %s1467_s12 }
  0x47   : > { %p1169_p11 = scmp.ne.s32.totalorder %s1467_s12, %s1168_s13  ;;  %p1177_p6 = scmp.lt.s32.totalorder %s1168_s13, %s1168_s13 }
  0x49   : > { %p1171_p9 = pnand %p1169_p11, %p1157_p2  ;;  %p1178_p13 = por %p1177_p6, %p1176_p8 }
  0x4b   : > { %p1172_p10 = pneg %p1171_p9 }
  0x4d   : > { %p1179_p7 = pnand %p1178_p13, %p1172_p10 }
  0x4f   : > { %1182 = shalt.err (!%p1179_p7)
}
  0x50   : > { %s1307_s19 = smov 128   ;;  %s1308_s0 = smov 8  }
  0x51   : > { %1041 = dma.hbm_to_vmem [thread:$0]  (!%p1474_p1), %s1712_s2, 768, %s1467_s12, [#allocation7], %s1307_s19, %s1307_s19, %s1308_s0  }
  0x52   : > { %s1183_s25 = scalar_lea.hbm %s1482_s26, 96  ;;  %p1734_p11 = scmp.ne.s32.totalorder %s1728_s7, 0 }
  0x53   : > { %p1184_p9 = scmp.ne.s32.totalorder %s1482_s26, %s1183_s25  ;;  %s1188_s8 = scalar_lea.hbm %s1713_s3, 192 }
  0x54   : > { %p1735_p6 = pneg %p1734_p11  ;;  %p1189_p10 = scmp.lt.u32.totalorder %s1482_s26, %s1713_s3 }
  0x55   : > { %p1190_p13 = scmp.lt.u32.totalorder %s1188_s8, %s1183_s25  ;;  %p1192_p2 = scmp.lt.u32.totalorder %s1183_s25, %s1482_s26 }
  0x56   : > { %p1186_p8 = pnand %p1184_p9, %p1735_p6 }
  0x57   : > { %p1191_p3 = por %p1190_p13, %p1189_p10 }
  0x58   : > { %p1187_p7 = pneg %p1186_p8 }
  0x59   : > { %p1193_p4 = por %p1192_p2, %p1191_p3 }
  0x5b   : > { %p1194_p5 = pnand %p1193_p4, %p1187_p7 }
  0x5d   : > { %1197 = shalt.err (!%p1194_p5)
}
  0x5e   : > { %s1198_s12 = scalar_lea.vmem %s1484_s23, 96  ;;  %p1736_p12 = pmov %p1735_p6 }
  0x5f   : > { %p1199_p1 = scmp.ne.s32.totalorder %s1484_s23, %s1198_s12  ;;  %s1309_s14 = smov [#allocation8]  }
  0x60   : > { %s1203_s19 = sshll.u32 %s1309_s14, 4  ;;  %s1204_s19 = int_to_ptr.vmem [resolvable:$false] %s1203_s19 }
  0x61   : > { %p1201_p0 = pnand %p1199_p1, %p1736_p12  ;;  %s1205_s0 = scalar_lea.vmem %s1204_s19, 192 }
  0x62   : > { %p1206_p6 = scmp.lt.s32.totalorder %s1484_s23, %s1204_s19  ;;  %p1207_p8 = scmp.lt.s32.totalorder %s1205_s0, %s1198_s12 }
  0x63   : > { %p1202_p9 = pneg %p1201_p0 }
  0x64   : > { %p1208_p10 = por %p1207_p8, %p1206_p6 }
  0x66   : > { %p1209_p13 = pnand %p1208_p10, %p1202_p9 }
  0x68   : > { %1212 = shalt.err (!%p1209_p13)
}
  0x69   : > { %1048 = dma.hbm_to_vmem [thread:$0]  (!%p1734_p11), %s1482_s26, 96, %s1484_s23, %s1408_s9  }
  0x6a   : > { %p1737_p7 = scmp.ne.s32.totalorder %s1732_s10, 0 }
  0x6b   : > { %s257_s21 = sand.u32 (!%p1737_p7), 1, %s1437_s28   ;;  %s1535_s24 = sand.u32 (!%p1737_p7), 1, %s1287_s16  }
  0x6c   : > { %255 = sbr.rel (%p1737_p7) target bundleno = 694 (0x2b6), region = 36  ;;  %s258_s25 = scalar_lea.sflag (!%p1737_p7), [#allocation4], %s257_s21 }
  0x6d   : > { %s260_s29 = scalar_lea.vmem (!%p1737_p7), [#allocation3], %s1535_s24  ;;  %p1738_p3 = scmp.ne.s32.totalorder (!%p1737_p7), %s1729_s5, 0 }
  0x73   : > { %1266 = dma.done.wait (%p1738_p3), %s258_s25, 16  }
  0x74   : > { %1268 = vsyncadd (%p1738_p3), %s258_s25, 4294967280  ;;  %p1739_p2 = scmp.eq.s32.totalorder %s1437_s28, 0 }
  0x76   : > { %1270 = dma.done.wait (%p1739_p2), [#allocation7], 768   ;;  %p1740_p11 = pmov %p1739_p2 }
  0x77   : > { %s1025_s7 = smul.u32 6, %s1535_s24 }
  0x78   : > { %1272 = vsyncadd (%p1740_p11), [#allocation7], 4294966528 }
  0x79   : > { %s273_s9 = scalar_lea.vmem [#allocation8], %s1025_s7 }
  0x7a   : > { %1274 = dma.done.wait (%p1738_p3), %s258_s25, 96  }
  0x7b   : > { %1276 = vsyncadd (%p1738_p3), %s258_s25, 4294967200  ;;  %p305_p4 = scmp.lt.s32.totalorder %s1295_s18, 1  ;;  %v382_v0 = vlaneseq  ;;  %v1310_v1 = vmov 0   ;;  %v1311_v2 = vmov 1983009808   ;;  %s1312_s5 = smov 127  }
  0x7c   : > { %1117 = vset.pattern.permute.xlu0 %v1310_v1  ;;  %v380_v3 = vunpack.c.l.s4 %v1311_v2  ;;  %501 = vmatprep.mubr.bf16.mxu0 %v1310_v1  ;;  %v376_v8 = vld [vmem:[%s273_s9] sm:$0x3f]  ;;  %v1313_v12 = vmov 1   ;;  %s1314_s11 = smov 126   ;;  %v314_v31 = vld [vmem:[#allocation6] sm:$0xff]  ;;  %v315_v32 = vld [vmem:[#allocation6 + $0x8] sm:$0xff] }
  0x7d   : > { %s306_s28 = scalar_select %p305_p4, %s1295_s18, 1  ;;  %v383_v4 = vshrl.u32 %v382_v0, 7  ;;  %v378_v10 = vcombine.high %v376_v8, %v376_v8  ;;  %v394_v11 = vcombine.low %v376_v8, %v376_v8  ;;  %v640_v13 = vld [vmem:[%s273_s9] sm:$0x3f]  ;;  %vm409_vm0 = vcmask 1039360   ;;  %v331_v36 = vld [vmem:[#allocation6 + $0x20] sm:$0xff] }
  0x7e   : > { %v381_v5 = vunpack.c.0.s8 %v380_v3  ;;  %v658_v17 = vcombine.low %v640_v13, %v640_v13  ;;  %v642_v22 = vcombine.high %v640_v13, %v640_v13  ;;  %v316_v33 = vld [vmem:[#allocation6 + $0x10] sm:$0xff]  ;;  %v330_v35 = vld [vmem:[#allocation6 + $0x18] sm:$0xff]  ;;  %v332_v37 = vld [vmem:[#allocation6 + $0x28] sm:$0xff]  ;;  %vm423_vm1 = vcmask 1041408   ;;  %s1315_s8 = smov 110   ;;  %s1317_s22 = smov 92  }
  0x7f   : > { %s307_s26 = scalar_lea.vmem %s1711_s1, %s306_s28  ;;  %v970_v46 = vld [vmem:[%s260_s29] ss:$0 sm:$0xff]  ;;  %vm420_vm2 = vcmask 1031168   ;;  %vm433_vm3 = vcmask 1043456   ;;  %vm356_vm4 = vcmask 97280   ;;  %v1316_v0 = vmov 0.0  }
  0x80   : > { %v384_v6 = vsub.s32 %v381_v5, %v383_v4  ;;  %v969_v7 = vld [vmem:[%s307_s26] ss:$0 sm:$0xff]  ;;  %989 = vmatprep.subr.bf16.mxu1 %v1316_v0  ;;  %vm1318_vm5 = vmmov 0   ;;  %vm452_vm6 = vcmask 900096   ;;  %vm459_vm7 = vcmask 1045504   ;;  %s1026_s13 = smul.u32 24, %s1535_s24 }
  0x81   : > { %323 = vperm.xlu0 %1117, %v969_v7   ;;  %991 = vmatprep.mubr.msk.bf16.mxu1 %vm1318_vm5, %v1316_v0  ;;  %vm372_vm8 = vcmask 93184   ;;  %vm711_vm9 = vcmask 752640   ;;  %s1027_s19 = smul.u32 384, %s1295_s18  ;;  %vm812_vm10 = vcmask 261120   ;;  %s815_s18 = scalar_lea.sflag [#allocation5], %s1535_s24 }
  0x82   : > { %v1558_v9 = vrot.slane %v376_v8, %v384_v6  ;;  %v1563_v15 = vrot.slane %v378_v10, %v384_v6  ;;  %v401_v16 = vrot.slane %v394_v11, %v384_v6  ;;  %v665_v20 = vrot.slane %v658_v17, %v384_v6  ;;  %s304_s12 = scalar_lea.vmem [#allocation9], %s1026_s13  ;;  %p1741_p1 = scmp.ne.s32.totalorder %s1730_s30, 0 }
  0x83   : > { %v1568_v23 = vrot.slane %v640_v13, %v384_v6  ;;  %v1572_v25 = vrot.slane %v642_v22, %v384_v6  ;;  %s833_s14 = sshll.u32 %s304_s12, 4  ;;  %s1663_s25 = scalar_lea.hbm %s1714_s4, %s1027_s19  ;;  %s1658_s14 = int_to_ptr.vmem [resolvable:$true] %s833_s14 }
  0x84   : > { %407 = vrot.lane.b32.xlu1 %v1558_v9, %s1312_s5  ;;  %v412_v14 = vcombine.low %v1558_v9, %v1558_v9  ;;  %v413_v18 = vcombine.low %v1563_v15, %v1563_v15  ;;  %v402_v19 = vcombine.high %v401_v16, %v401_v16  ;;  %v666_v21 = vcombine.high %v665_v20, %v665_v20  ;;  %s1213_s29 = scalar_lea.vmem %s1658_s14, 384  ;;  %s1319_s7 = smov [#allocation9]  }
  0x85   : > { %1118 = vset.pattern.permute.xlu0 %v1313_v12  ;;  %v675_v24 = vcombine.low %v1568_v23, %v1568_v23  ;;  %v676_v26 = vcombine.low %v1572_v25, %v1572_v25  ;;  %v393_v48 = vcombine.high %v1558_v9, %v1558_v9  ;;  %v657_v17 = vcombine.high %v1568_v23, %v1568_v23  ;;  %p1214_p5 = scmp.ne.s32.totalorder %s1658_s14, %s1213_s29  ;;  %s1217_s9 = sshll.u32 %s1319_s7, 4  ;;  %s1218_s9 = int_to_ptr.vmem [resolvable:$false] %s1217_s9 }
  0x86   : > { %334 = vperm.xlu0 %1118, %v969_v7   ;;  %s1219_s28 = scalar_lea.vmem %s1218_s9, 768  ;;  %p1220_p9 = scmp.lt.s32.totalorder %s1658_s14, %s1218_s9 }
  0x87   : > { %p1215_p12 = pnand %p1214_p5, %p1741_p1  ;;  %p1221_p6 = scmp.lt.s32.totalorder %s1219_s28, %s1213_s29 }
  0x88   : > { %416 = vrot.lane.b32.xlu1 %v1558_v9, %s1314_s11 }
  0x89   : > { %p1216_p0 = pneg %p1215_p12  ;;  %p1222_p8 = por %p1221_p6, %p1220_p9 }
  0x8a   : > { %414 = vrot.lane.b32.xlu0 %v412_v14, %s1314_s11 }
  0x8b   : > { %p1223_p10 = pnand %p1222_p8, %p1216_p0 }
  0x8c   : > { %403 = vrot.lane.b32.xlu1 %v401_v16, %s1312_s5 }
  0x8e   : > { %418 = vrot.lane.b32.xlu0 %v413_v18, %s1314_s11 }
  0x90   : > { %405 = vrot.lane.b32.xlu1 %v402_v19, %s1312_s5 }
  0x92   : > { %669 = vrot.lane.b32.xlu0 %v666_v21, %s1312_s5 }
  0x94   : > { %667 = vrot.lane.b32.xlu1 %v665_v20, %s1312_s5 }
  0x96   : > { %677 = vrot.lane.b32.xlu0 %v675_v24, %s1314_s11 }
  0x98   : > { %671 = vrot.lane.b32.xlu1 %v1568_v23, %s1312_s5 }
  0x9a   : > { %681 = vrot.lane.b32.xlu0 %v676_v26, %s1314_s11 }
  0x9c   : > { %679 = vrot.lane.b32.xlu1 %v1568_v23, %s1314_s11 }
  0xf6   : > { %v408_v27 = vpop.permute.xlu1 %407 }
  0xf7   : > { %v432_v4 = vsel %vm423_vm1, %v1563_v15, %v408_v27 }
  0xfa   : > { %v417_v28 = vpop.permute.xlu1 %416 }
  0xfe   : > { %v404_v29 = vpop.permute.xlu1 %403 }
 0x100   : > { %v324_v30 = vpop.permute.xlu0 %323 }
 0x101   : > { %v326_v38 = vmul.f32 %v324_v30, %v314_v31  ;;  %v327_v39 = vmul.f32 %v324_v30, %v315_v32  ;;  %v328_v42 = vmul.f32 %v324_v30, %v316_v33 }
 0x102   : > { %v406_v34 = vpop.permute.xlu1 %405 }
 0x103   : > { %v410_v41 = vsel %vm409_vm0, %v404_v29, %v406_v34  ;;  %v411_v47 = vsel %vm409_vm0, %v406_v34, %v408_v27 }
 0x104   : > { %v426_v53 = vsel %vm423_vm1, %v1558_v9, %v410_v41  ;;  %v429_v60 = vsel %vm423_vm1, %v393_v48, %v411_v47 }
 0x105   : > { %v335_v40 = vpop.permute.xlu0 %334 }
 0x106   : > { %v337_v43 = vmul.f32 %v335_v40, %v330_v35  ;;  %v338_v44 = vmul.f32 %v335_v40, %v331_v36  ;;  %v339_v45 = vmul.f32 %v335_v40, %v332_v37  ;;  %v668_v49 = vpop.permute.xlu1 %667 }
 0x108   : > { %v340_v50 = vadd.f32 %v337_v43, %v326_v38  ;;  %v341_v51 = vadd.f32 %v338_v44, %v327_v39  ;;  %v342_v52 = vadd.f32 %v339_v45, %v328_v42 }
 0x109   : > { %v415_v54 = vpop.permute.xlu0 %414 }
 0x10a   : > { %v1586_v55 = vmul.f32 %v970_v46, %v340_v50  ;;  %v1588_v56 = vmul.f32 %v970_v46, %v341_v51  ;;  %v421_v57 = vsel %vm420_vm2, %v415_v54, %v417_v28  ;;  %v1591_v58 = vmul.f32 %v970_v46, %v342_v52  ;;  %v672_v3 = vpop.permute.xlu1 %671 }
 0x10b   : > { %v1594_v59 = vsel %vm433_vm3, %v426_v53, %v421_v57  ;;  %v693_v26 = vsel %vm423_vm1, %v1572_v25, %v672_v3 }
 0x10c   : > { %446 = vrot.lane.b32.xlu0 %v1594_v59, %s1315_s8  ;;  %v353_v61 = vmul.f32 %v1586_v55, %v1586_v55  ;;  %v354_v62 = vmul.f32 %v1588_v56, %v1588_v56  ;;  %v355_v63 = vmul.f32 %v1591_v58, %v1591_v58 }
 0x10d   : > { %v419_v2 = vpop.permute.xlu0 %418 }
 0x10e   : > { %v422_v5 = vsel %vm420_vm2, %v417_v28, %v419_v2  ;;  %v357_v6 = vsel %vm356_vm4, %v353_v61, 0.0  ;;  %v358_v7 = vsel %vm356_vm4, %v354_v62, 0.0  ;;  %v360_v10 = vsel %vm356_vm4, %v355_v63, 0.0  ;;  %v680_v15 = vpop.permute.xlu1 %679 }
 0x10f   : > { %v437_v8 = vsel %vm433_vm3, %v429_v60, %v422_v5  ;;  %v359_v9 = vadd.f32 %v358_v7, %v357_v6  ;;  %v439_v12 = vsel %vm433_vm3, %v432_v4, %v419_v2 }
 0x110   : > { %448 = vrot.lane.b32.xlu0 %v437_v8, %s1315_s8  ;;  %v557_v50 = vsel %vm459_vm7, %v439_v12, 0 }
 0x111   : > { %v361_v11 = vadd.f32 %v360_v10, %v359_v9  ;;  %v670_v13 = vpop.permute.xlu0 %669 }
 0x112   : > { %v673_v14 = vsel %vm409_vm0, %v668_v49, %v670_v13  ;;  %v674_v18 = vsel %vm409_vm0, %v670_v13, %v672_v3  ;;  %v553_v49 = vsel %vm459_vm7, %v1594_v59, 0 }
 0x113   : > { %362 = vadd.xlane.f32.xlu1 %v361_v11  ;;  %v687_v16 = vsel %vm423_vm1, %v1568_v23, %v673_v14  ;;  %v690_v22 = vsel %vm423_vm1, %v657_v17, %v674_v18 }
 0x114   : > { %450 = vrot.lane.b32.xlu0 %v439_v12, %s1315_s8 }
 0x115   : > { %v678_v19 = vpop.permute.xlu0 %677 }
 0x116   : > { %v683_v20 = vsel %vm420_vm2, %v678_v19, %v680_v15 }
 0x117   : > { %v695_v21 = vsel %vm433_vm3, %v687_v16, %v683_v20 }
 0x118   : > { %705 = vrot.lane.b32.xlu0 %v695_v21, %s1317_s22 }
 0x119   : > { %v682_v24 = vpop.permute.xlu0 %681 }
 0x11a   : > { %v684_v27 = vsel %vm420_vm2, %v680_v15, %v682_v24  ;;  %v699_v23 = vsel %vm433_vm3, %v693_v26, %v682_v24 }
 0x11b   : > { %v697_v28 = vsel %vm433_vm3, %v690_v22, %v684_v27 }
 0x11c   : > { %707 = vrot.lane.b32.xlu0 %v697_v28, %s1317_s22 }
 0x120   : > { %709 = vrot.lane.b32.xlu0 %v699_v23, %s1317_s22 }
 0x17e   : > { %v447_v29 = vpop.permute.xlu0 %446 }
 0x182   : > { %v449_v30 = vpop.permute.xlu0 %448 }
 0x183   : > { %v453_v31 = vsel %vm452_vm6, %v447_v29, %v449_v30 }
 0x184   : > { %v461_v25 = vsel %vm459_vm7, %v453_v31, 0 }
 0x186   : > { %v451_v32 = vpop.permute.xlu0 %450 }
 0x187   : > { %v454_v33 = vsel %vm452_vm6, %v449_v30, %v451_v32  ;;  %v467_v34 = vsel %vm459_vm7, %v451_v32, 0 }
 0x188   : > { %971 = vmatprep.subr.msk.bf16.mxu0 %vm459_vm7, %v454_v33  ;;  %990 = vmatpush3.bf16.msra.mxu1 %v467_v34 }
 0x189   : > { %470 = vmatpush1.bf16.msra.mxu0 %v461_v25  ;;  %995 = vmatprep.subr.bf16.mxu1 %v1316_v0 }
 0x18a   : > { %974 = vmatprep.subr.msk.bf16.mxu0 %vm459_vm7, %v437_v8  ;;  %v706_v37 = vpop.permute.xlu0 %705 }
 0x18e   : > { %v708_v45 = vpop.permute.xlu0 %707 }
 0x18f   : > { %v712_v51 = vsel %vm711_vm9, %v706_v37, %v708_v45 }
 0x190   : > { %v718_v53 = vsel %vm459_vm7, %v712_v51, 0 }
 0x192   : > { %v710_v46 = vpop.permute.xlu0 %709 }
 0x193   : > { %v713_v47 = vsel %vm711_vm9, %v708_v45, %v710_v46  ;;  %v724_v54 = vsel %vm459_vm7, %v710_v46, 0 }
 0x1a0   : > { %v363_v35 = vpop.xlane.xlu1 %362 }
 0x1a1   : > { %v364_v36 = vmax.f32 %v363_v35, 1e-08 }
 0x1a3   : > { %1123 = vrsqrt.f32 %v364_v36 }
 0x1ad   : > { %v1124_v38 = vpop.eup %1123 }
 0x1ae   : > { %v366_v39 = vmul.f32 %v1124_v38, %v1586_v55  ;;  %v367_v40 = vmul.f32 %v1124_v38, %v1588_v56  ;;  %v368_v41 = vmul.f32 %v1124_v38, %v1591_v58 }
 0x1b0   : > { %v369_v42 = vpack.c.bf16 %v366_v39, %v366_v39  ;;  %v370_v43 = vpack.c.bf16 %v367_v40, %v367_v40  ;;  %v371_v44 = vpack.c.bf16 %v368_v41, %v368_v41 }
 0x1b2   : > { %373 = vst.msk [vmem:[#allocation2] sm:$0xf] %vm372_vm8, %v369_v42  ;;  %374 = vst.msk [vmem:[#allocation2 + $0x4] sm:$0xf] %vm372_vm8, %v370_v43 }
 0x1b3   : > { %375 = vst.msk [vmem:[#allocation2 + $0x8] sm:$0xf] %vm372_vm8, %v371_v44 }
 0x1b9   : > { %v442_v48 = vld [vmem:[#allocation2 + $0x4] sm:$0xf]  ;;  %v440_v52 = vld [vmem:[#allocation2] sm:$0xf] }
 0x1ba   : > { %972 = vmatmul.mubr.msk.bf16.vlgmr.msra.gmra.mrb[0].mxu0 %vm356_vm4, %v442_v48  ;;  %992 = vmatmul.mubr.msk.bf16.vlgmr.msra.gmra.mrb[0].mxu1 %vm356_vm4, %v442_v48  ;;  %v701_v55 = vld [vmem:[#allocation2 + $0x8] sm:$0xf] }
 0x1bb   : > { %560 = vmatpush1.bf16.msra.mxu0 %v553_v49  ;;  %996 = vmatpush3.bf16.msra.mxu1 %v557_v50 }
 0x1bc   : > { %977 = vmatprep.subr.msk.bf16.mxu0 %vm459_vm7, %v713_v47  ;;  %591 = vmatprep.mubr.bf16.mxu0 %v1310_v1 }
 0x1bd   : > { %997 = vmatprep.mubr.msk.bf16.mxu1 %vm1318_vm5, %v1316_v0  ;;  %1001 = vmatprep.subr.bf16.mxu1 %v1316_v0 }
 0x1c6   : > { %975 = vmatmul.mubr.msk.bf16.vlgmr.msra.gmra.mrb[0].mxu0 %vm356_vm4, %v440_v52  ;;  %998 = vmatmul.mubr.msk.bf16.vlgmr.msra.gmra.mrb[0].mxu1 %vm356_vm4, %v440_v52 }
 0x1c7   : > { %727 = vmatpush1.bf16.msra.mxu0 %v718_v53  ;;  %1002 = vmatpush3.bf16.msra.mxu1 %v724_v54 }
 0x1c8   : > { %758 = vmatprep.mubr.bf16.mxu0 %v1310_v1  ;;  %1003 = vmatprep.mubr.msk.bf16.mxu1 %vm1318_vm5, %v1316_v0 }
 0x1d2   : > { %978 = vmatmul.mubr.msk.bf16.vlgmr.msra.gmra.mrb[0].mxu0 %vm356_vm4, %v701_v55  ;;  %1004 = vmatmul.mubr.msk.bf16.vlgmr.msra.gmra.mrb[0].mxu1 %vm356_vm4, %v701_v55 }
 0x2a5   : > { %v760_v1 = vpop.f32.mrb[0].mxu0  ;;  %v801_v56 = vpop.f32.mrb[0].mxu1 }
 0x2a6   : > { %810 = vst [vmem:[%s304_s12] sm:$0xff] %v760_v1  ;;  %813 = vst.msk [vmem:[%s304_s12 + $0x10] sm:$0xff] %vm812_vm10, %v801_v56  ;;  %v762_v57 = vpop.f32.mrb[1].mxu0  ;;  %v1005_v58 = vpop.f32.mrb[1].mxu1 }
 0x2a7   : > { %811 = vst [vmem:[%s304_s12 + $0x8] sm:$0xff] %v762_v57  ;;  %v764_v59 = vpop.f32.mrb[2].mxu0  ;;  %v804_v60 = vpop.f32.mrb[2].mxu1 }
 0x2a8   : > { %v765_v61 = vpop.f32.mrb[3].mxu0  ;;  %v1006_v62 = vpop.f32.mrb[3].mxu1 }
 0x2a9   : > { %1226 = shalt.err (!%p1223_p10)
}
 0x2aa   : > { %s1227_s24 = scalar_lea.hbm %s1663_s25, 384  ;;  %s1231_s26 = scalar_lea.hbm %s1714_s4, 768 }
 0x2ab   : > { %p1228_p13 = scmp.ne.s32.totalorder %s1663_s25, %s1227_s24  ;;  %p1232_p2 = scmp.lt.u32.totalorder %s1663_s25, %s1714_s4 }
 0x2ac   : > { %p1233_p11 = scmp.lt.u32.totalorder %s1231_s26, %s1227_s24  ;;  %p1235_p5 = scmp.lt.u32.totalorder %s1227_s24, %s1663_s25 }
 0x2ad   : > { %p1229_p7 = pnand %p1228_p13, %p1741_p1 }
 0x2ae   : > { %p1234_p4 = por %p1233_p11, %p1232_p2 }
 0x2af   : > { %p1230_p3 = pneg %p1229_p7 }
 0x2b0   : > { %p1236_p12 = por %p1235_p5, %p1234_p4 }
 0x2b2   : > { %p1237_p0 = pnand %p1236_p12, %p1230_p3 }
 0x2b4   : > { %1240 = shalt.err (!%p1237_p0)
}
 0x2b5   : > { %1036 = dma.vmem_to_hbm [thread:$0]  (%p1741_p1), %s1658_s14, 384, %s1663_s25, %s815_s18  }
 0x2b6 PF: > { %s845_s8 = sand.u32 1, %s1283_s15   ;;  %p1742_p9 = scmp.ne.s32.totalorder %s1731_s6, 0 }
 0x2b7   : > { %p1743_p6 = scmp.ge.s32.totalorder %s1303_s20, 2  ;;  %s846_s22 = scalar_lea.sflag [#allocation5], %s845_s8 }
 0x2b9   : > { %p1050_p8 = pnand %p1743_p6, %p1742_p9 }
 0x2bb   : > { %1278 = dma.done.wait (!%p1050_p8), %s846_s22, 384  }
 0x2bc   : > { %1280 = vsyncadd (!%p1050_p8), %s846_s22, 4294966912  ;;  %s21_s20 = sadd.s32 1, %s1303_s20   ;;  %s1744_s18 = sld [smem:[#allocation14_spill]] }
 0x2bd   : > { %p18_p10 = scmp.ge.s32.totalorder %s21_s20, 4   ;;  %s1745_s19 = sld [smem:[#allocation15_spill]] }
 0x2be   : > { %s1746_s15 = smov %s1287_s16  ;;  %s1747_s16 = smov %s1291_s17 }
 0x2bf   : > { %s1748_s17 = smov %s1393_s27  ;;  %20 = sbr.rel (!%p18_p10) target bundleno = 9 (0x9), region = 107 }
 0x2c6   :  { %851 = vsyncpa [#allocation4], 1 }
 0x2c7   :  { %853 = vsyncpa [#allocation4 + $0x1], 1 }
 0x2c8   :  { %854 = vsyncpa [#allocation7], 1 }
 0x2c9   :  { %855 = vsyncpa [#allocation5], 1 }
 0x2ca   :  { %857 = vsyncpa [#allocation5 + $0x1], 1 }

</bundles_post_ra>
